<compile_context>
chip_gen: v7x
topology: tpu7x:2x2x1
jax: 0.10.0
libtpu: 0.0.40
codegen_flags: <defaults>
</compile_context>

<pallas_src>
import functools

import jax
import jax.numpy as jnp
from jax.experimental import pallas as pl
from jax.experimental.pallas import tpu as pltpu


def _round_up(x, m):
    return ((x + m - 1) // m) * m


def _device_kind():
    try:
        return jax.devices()[0].device_kind.lower()
    except Exception:
        return ""


def _default_act_dtype():
    # bf16 VPU/EUP exists on v6e / v7x; keep f32 math on v5 and older.
    kind = _device_kind()
    if any(v in kind for v in ("v2", "v3", "v4", "v5")):
        return jnp.float32
    return jnp.bfloat16


def _num_tensorcores():
    # v7x has 2 TensorCores per chip; v5e / v6e have 1.
    return 2 if "v7" in _device_kind() else 1


def _critic_kernel(s_ref, w1_ref, b1_ref, w2_ref, b2_ref, w3_ref, b3_ref,
                   o_ref, *, use_tanh, act_dtype):
    act = jnp.tanh if use_tanh else (lambda x: jnp.maximum(x, 0))

    # In-kernel cast of the streamed f32 tile; contraction over state_dim done
    # directly by dot_general (x @ w.T form), no wrapper-side transpose.
    s_bf = s_ref[...].astype(jnp.bfloat16)                  # [tb, state_dim]

    # fc1: [hidden, state_dim] x [tb, state_dim]^T -> [hidden, tb], f32 acc.
    h = jax.lax.dot_general(
        w1_ref[...], s_bf, (((1,), (1,)), ((), ())),
        preferred_element_type=jnp.float32)
    h = act((h + b1_ref[...]).astype(act_dtype))

    # fc2: [hidden, hidden] @ [hidden, tb] -> [hidden, tb], f32 acc.
    h = jnp.dot(w2_ref[...], h.astype(jnp.bfloat16),
                preferred_element_type=jnp.float32)
    h = act((h + b2_ref[...]).astype(act_dtype))

    # fc3 (value head, out_features == 1): VPU multiply + sublane reduce
    # instead of an N=1 MXU matmul.  Result is lane-dense [1, tb].
    v = jnp.sum(h.astype(jnp.float32) * w3_ref[...], axis=0, keepdims=True)
    o_ref[...] = (v + b3_ref[0, 0]).astype(o_ref.dtype)


def critic_forward(s, w1, b1, w2, b2, w3, b3, *, use_tanh=True,
                   block_cols=8192, act_dtype=None):
    """Critic forward pass.

    Args (PyTorch layouts):
      s : [B, state_dim] f32
      w1: [hidden, state_dim], b1: [hidden]
      w2: [hidden, hidden],    b2: [hidden]
      w3: [1, hidden],         b3: [1]
    Returns:
      v : [B, 1] f32
    """
    B, state_dim = s.shape
    hidden = w1.shape[0]
    if act_dtype is None:
        act_dtype = _default_act_dtype()

    # Batch tile: lane-dense (multiple of 128), large to amortize per-step grid
    # overhead, but capped so v7x's 2 TensorCores both get work when possible.
    cores = _num_tensorcores()
    block_cols = max(128, _round_up(block_cols, 128))
    b_pad128 = _round_up(max(B, 1), 128)
    tb_cap = _round_up(pl.cdiv(b_pad128, cores), 128) if cores > 1 else b_pad128
    tb = max(128, min(block_cols, tb_cap))
    b_pad = _round_up(max(B, 1), tb)
    num_tiles = b_pad // tb

    # Stream s in its natural [B, state_dim] f32 layout; zero-pad rows only if
    # the batch is ragged w.r.t. the tile (padded rows are sliced away below).
    s_in = s if b_pad == B else jnp.pad(s, ((0, b_pad - B), (0, 0)))

    w1b = w1.astype(jnp.bfloat16)                       # [hidden, state_dim]
    w2b = w2.astype(jnp.bfloat16)                       # [hidden, hidden]
    b1c = b1.reshape(hidden, 1).astype(jnp.float32)     # broadcast over lanes
    b2c = b2.reshape(hidden, 1).astype(jnp.float32)
    w3c = w3.reshape(1, hidden).T.astype(jnp.float32)   # [hidden, 1] column
    b3s = b3.reshape(1, 1).astype(jnp.float32)          # scalar -> SMEM

    kernel = functools.partial(_critic_kernel, use_tanh=use_tanh,
                               act_dtype=act_dtype)

    out = pl.pallas_call(
        kernel,
        out_shape=jax.ShapeDtypeStruct((1, b_pad), jnp.float32),
        grid=(num_tiles,),
        in_specs=[
            # s: streamed per grid step in natural layout
            pl.BlockSpec((tb, state_dim), lambda i: (i, 0)),
            # weights / biases: constant index_map -> VMEM-resident across steps
            pl.BlockSpec((hidden, state_dim), lambda i: (0, 0)),
            pl.BlockSpec((hidden, 1), lambda i: (0, 0)),
            pl.BlockSpec((hidden, hidden), lambda i: (0, 0)),
            pl.BlockSpec((hidden, 1), lambda i: (0, 0)),
            pl.BlockSpec((hidden, 1), lambda i: (0, 0)),
            # scalar bias in SMEM
            pl.BlockSpec(memory_space=pltpu.MemorySpace.SMEM),
        ],
        out_specs=pl.BlockSpec((1, tb), lambda i: (0, i)),
        compiler_params=pltpu.CompilerParams(
            dimension_semantics=("parallel",),
        ),
    )(s_in, w1b, b1c, w2b, b2c, w3c, b3s)

    return out[0, :B].reshape(B, 1)


def orthogonal(key, rows, cols, gain=1.0):
    """Deterministic orthogonal init (matches nn.init.orthogonal_ semantics)."""
    n, m = max(rows, cols), min(rows, cols)
    a = jax.random.normal(key, (n, m), dtype=jnp.float32)
    q, r = jnp.linalg.qr(a)
    d = jnp.diagonal(r)
    q = q * jnp.where(d >= 0, 1.0, -1.0)  # robust sign fix (no 0 sign)
    if rows < cols:
        q = q.T
    return gain * q[:rows, :cols]


if __name__ == "__main__":
    state_dim = 16
    hidden = 32
    batch = 8

    key = jax.random.PRNGKey(0)
    k_s, k1, k2, k3 = jax.random.split(key, 4)

    # Parameters in PyTorch layout: weight [out, in], bias [out]; zero biases.
    w1 = orthogonal(k1, hidden, state_dim)
    b1 = jnp.zeros((hidden,), jnp.float32)
    w2 = orthogonal(k2, hidden, hidden)
    b2 = jnp.zeros((hidden,), jnp.float32)
    w3 = orthogonal(k3, 1, hidden)
    b3 = jnp.zeros((1,), jnp.float32)

    s = jax.random.normal(k_s, (batch, state_dim), dtype=jnp.float32)

    act_dtype = _default_act_dtype()
    v = critic_forward(s, w1, b1, w2, b2, w3, b3, act_dtype=act_dtype)
    jax.block_until_ready(v)
    assert v.shape == (batch, 1)

    # Matched-precision reference (same bf16 MXU inputs, f32 accumulation,
    # same activation dtype as the kernel).
    w1b, w2b = w1.astype(jnp.bfloat16), w2.astype(jnp.bfloat16)
    h = jnp.dot(s.astype(jnp.bfloat16), w1b.T,
                preferred_element_type=jnp.float32) + b1
    h = jnp.tanh(h.astype(act_dtype))
    h = jnp.dot(h.astype(jnp.bfloat16), w2b.T,
                preferred_element_type=jnp.float32) + b2
    h = jnp.tanh(h.astype(act_dtype))
    ref_matched = jnp.dot(h.astype(jnp.float32), w3.T) + b3
    assert jnp.allclose(v, ref_matched, atol=1e-2, rtol=1e-2), \
        "mismatch vs matched-precision reference"

    # Loose sanity check vs full-f32 math (bf16 streaming error only).
    h32 = jnp.tanh(s @ w1.T + b1)
    h32 = jnp.tanh(h32 @ w2.T + b2)
    ref_f32 = h32 @ w3.T + b3
    assert jnp.allclose(v, ref_f32, atol=5e-2), "mismatch vs f32 reference"

    print("KERNEL_OK")
</pallas_src>

<mosaic_0001>
module attributes {stable_mosaic.version = 11 : i64} {
  func.func @_critic_kernel(%arg0: i32, %arg1: memref<128x16xf32, #tpu.memory_space<vmem>>, %arg2: memref<32x16xbf16, #tpu.memory_space<vmem>>, %arg3: memref<32x1xf32, #tpu.memory_space<vmem>>, %arg4: memref<32x32xbf16, #tpu.memory_space<vmem>>, %arg5: memref<32x1xf32, #tpu.memory_space<vmem>>, %arg6: memref<32x1xf32, #tpu.memory_space<vmem>>, %arg7: memref<1x1xf32, #tpu.memory_space<smem>>, %arg8: memref<1x128xf32, #tpu.memory_space<vmem>>) attributes {dimension_semantics = [#tpu.dimension_semantics<parallel>], iteration_bounds = array<i64: 1>, scalar_prefetch = 0 : i64, scratch_operands = 0 : i64, tpu.core_type = #tpu.core_type<tc>, window_params = [{transform_indices = @transform_0, window_bounds = array<i64: 128, 16>}, {pipeline_mode = #tpu.pipeline_mode<synchronous>, transform_indices = @transform_1, window_bounds = array<i64: 32, 16>}, {pipeline_mode = #tpu.pipeline_mode<synchronous>, transform_indices = @transform_2, window_bounds = array<i64: 32, 1>}, {pipeline_mode = #tpu.pipeline_mode<synchronous>, transform_indices = @transform_3, window_bounds = array<i64: 32, 32>}, {pipeline_mode = #tpu.pipeline_mode<synchronous>, transform_indices = @transform_4, window_bounds = array<i64: 32, 1>}, {pipeline_mode = #tpu.pipeline_mode<synchronous>, transform_indices = @transform_5, window_bounds = array<i64: 32, 1>}, {transform_indices = @transform_6, window_bounds = array<i64: 1, 1>}, {transform_indices = @transform_7, window_bounds = array<i64: 1, 128>}]} {
    %c0 = arith.constant 0 : index
    %c0_0 = arith.constant 0 : index
    %0 = vector.load %arg1[%c0, %c0_0] : memref<128x16xf32, #tpu.memory_space<vmem>>, vector<128x16xf32>
    %1 = arith.truncf %0 : vector<128x16xf32> to vector<128x16xbf16>
    %c0_1 = arith.constant 0 : index
    %c0_2 = arith.constant 0 : index
    %2 = vector.load %arg2[%c0_1, %c0_2] : memref<32x16xbf16, #tpu.memory_space<vmem>>, vector<32x16xbf16>
    %cst = arith.constant dense<0.000000e+00> : vector<32x128xf32>
    %3 = tpu.matmul %2, %1, %cst {dimension_numbers = #tpu.dot_dimension_numbers<[1], [1], [0], [0], [0, 0, 1, 0], [], []>} : vector<32x16xbf16>, vector<128x16xbf16>, vector<32x128xf32> -> vector<32x128xf32>
    %c0_3 = arith.constant 0 : index
    %c0_4 = arith.constant 0 : index
    %4 = vector.load %arg3[%c0_3, %c0_4] : memref<32x1xf32, #tpu.memory_space<vmem>>, vector<32x1xf32>
    %5 = vector.broadcast %4 : vector<32x1xf32> to vector<32x128xf32>
    %6 = arith.addf %3, %5 : vector<32x128xf32>
    %7 = arith.truncf %6 : vector<32x128xf32> to vector<32x128xbf16>
    %8 = math.tanh %7 : vector<32x128xbf16>
    %c0_5 = arith.constant 0 : index
    %c0_6 = arith.constant 0 : index
    %9 = vector.load %arg4[%c0_5, %c0_6] : memref<32x32xbf16, #tpu.memory_space<vmem>>, vector<32x32xbf16>
    %cst_7 = arith.constant dense<0.000000e+00> : vector<32x128xf32>
    %10 = tpu.matmul %9, %8, %cst_7 {dimension_numbers = #tpu.dot_dimension_numbers<[1], [0], [0], [1], [0, 0, 1, 1], [], []>} : vector<32x32xbf16>, vector<32x128xbf16>, vector<32x128xf32> -> vector<32x128xf32>
    %c0_8 = arith.constant 0 : index
    %c0_9 = arith.constant 0 : index
    %11 = vector.load %arg5[%c0_8, %c0_9] : memref<32x1xf32, #tpu.memory_space<vmem>>, vector<32x1xf32>
    %12 = vector.broadcast %11 : vector<32x1xf32> to vector<32x128xf32>
    %13 = arith.addf %10, %12 : vector<32x128xf32>
    %14 = arith.truncf %13 : vector<32x128xf32> to vector<32x128xbf16>
    %15 = math.tanh %14 : vector<32x128xbf16>
    %16 = arith.extf %15 : vector<32x128xbf16> to vector<32x128xf32>
    %c0_10 = arith.constant 0 : index
    %c0_11 = arith.constant 0 : index
    %17 = vector.load %arg6[%c0_10, %c0_11] : memref<32x1xf32, #tpu.memory_space<vmem>>, vector<32x1xf32>
    %18 = vector.broadcast %17 : vector<32x1xf32> to vector<32x128xf32>
    %19 = arith.mulf %16, %18 : vector<32x128xf32>
    %cst_12 = arith.constant dense<0.000000e+00> : vector<128xf32>
    %20 = vector.multi_reduction <add>, %19, %cst_12 [0] : vector<32x128xf32> to vector<128xf32>
    %21 = vector.shape_cast %20 : vector<128xf32> to vector<1x128xf32>
    %c0_13 = arith.constant 0 : index
    %c0_14 = arith.constant 0 : index
    %22 = memref.load %arg7[%c0_13, %c0_14] : memref<1x1xf32, #tpu.memory_space<smem>>
    %23 = vector.broadcast %22 : f32 to vector<1x128xf32>
    %24 = arith.addf %21, %23 : vector<1x128xf32>
    %c0_15 = arith.constant 0 : index
    %c0_16 = arith.constant 0 : index
    %25 = vector.load %arg8[%c0_15, %c0_16] : memref<1x128xf32, #tpu.memory_space<vmem>>, vector<1x128xf32>
    tpu.vector_store %arg8[%c0_15, %c0_16], %24 {strides = array<i32>} : memref<1x128xf32, #tpu.memory_space<vmem>>, vector<1x128xf32>,
    return
  }
  func.func @transform_0(%arg0: i32) -> (i32, i32) {
    %c0_i32 = arith.constant 0 : i32
    %c0_i32_0 = arith.constant 0 : i32
    return %arg0, %c0_i32 : i32, i32
  }
  func.func @transform_1(%arg0: i32) -> (i32, i32) {
    %c0_i32 = arith.constant 0 : i32
    %c0_i32_0 = arith.constant 0 : i32
    %c0_i32_1 = arith.constant 0 : i32
    return %c0_i32, %c0_i32_0 : i32, i32
  }
  func.func @transform_2(%arg0: i32) -> (i32, i32) {
    %c0_i32 = arith.constant 0 : i32
    %c0_i32_0 = arith.constant 0 : i32
    %c0_i32_1 = arith.constant 0 : i32
    return %c0_i32, %c0_i32_0 : i32, i32
  }
  func.func @transform_3(%arg0: i32) -> (i32, i32) {
    %c0_i32 = arith.constant 0 : i32
    %c0_i32_0 = arith.constant 0 : i32
    %c0_i32_1 = arith.constant 0 : i32
    return %c0_i32, %c0_i32_0 : i32, i32
  }
  func.func @transform_4(%arg0: i32) -> (i32, i32) {
    %c0_i32 = arith.constant 0 : i32
    %c0_i32_0 = arith.constant 0 : i32
    %c0_i32_1 = arith.constant 0 : i32
    return %c0_i32, %c0_i32_0 : i32, i32
  }
  func.func @transform_5(%arg0: i32) -> (i32, i32) {
    %c0_i32 = arith.constant 0 : i32
    %c0_i32_0 = arith.constant 0 : i32
    %c0_i32_1 = arith.constant 0 : i32
    return %c0_i32, %c0_i32_0 : i32, i32
  }
  func.func @transform_6(%arg0: i32) -> (i32, i32) {
    %c0_i32 = arith.constant 0 : i32
    %c0_i32_0 = arith.constant 0 : i32
    %c0_i32_1 = arith.constant 0 : i32
    return %c0_i32, %c0_i32_0 : i32, i32
  }
  func.func @transform_7(%arg0: i32) -> (i32, i32) {
    %c0_i32 = arith.constant 0 : i32
    %c0_i32_0 = arith.constant 0 : i32
    return %c0_i32, %arg0 : i32, i32
  }
}

</mosaic_0001>

<bundles_post_ra>
// kernel: tpu_custom_call.1
= control target key start
LH: loop header
LB: loop body
LE: loop exit
PB: predicated region body
PF: predicated region fallthrough
CT: control target
= control target key end

     0   :  { %vm91_vm0 = vcmask 130048   ;;  %v430_v5 = vmov 0   ;;  %s603_s0 = inlined_call_operand.vmem [shape: f32[128,16], index: 0, kind: input, shape index: {}]   ;;  %s604_s1 = inlined_call_operand.vmem [shape: bf16[32,16], index: 1, kind: input, shape index: {}]   ;;  %s605_s2 = inlined_call_operand.vmem [shape: f32[32,1], index: 2, kind: input, shape index: {}]   ;;  %s606_s3 = inlined_call_operand.vmem [shape: bf16[32,32], index: 3, kind: input, shape index: {}]   ;;  %s607_s4 = inlined_call_operand.vmem [shape: f32[32,1], index: 4, kind: input, shape index: {}]   ;;  %s608_s5 = inlined_call_operand.vmem [shape: f32[32,1], index: 5, kind: input, shape index: {}]   ;;  %s609_s6 = inlined_call_operand.<no memory space> [shape: f32[1,1], index: 6, kind: input, shape index: {}]   ;;  %s610_s7 = inlined_call_operand.hbm [shape: f32[1,128], index: 7, kind: output, shape index: {}]  }
   0x1   :  { %v29_v0 = vld [vmem:[%s603_s0] sm:$0xff]  ;;  %v30_v1 = vld [vmem:[%s603_s0 + $0x8] sm:$0xff]  ;;  %v31_v2 = vld [vmem:[%s603_s0 + $0x10] sm:$0xff]  ;;  %392 = vset.pattern.permute.xlu0 %v430_v5  ;;  %393 = vset.pattern.permute.xlu1 %v430_v5 }
   0x2   :  { %v45_v3 = vpack.c.bf16 %v30_v1, %v29_v0  ;;  %v32_v4 = vld [vmem:[%s603_s0 + $0x18] sm:$0xff]  ;;  %v33_v8 = vld [vmem:[%s603_s0 + $0x20] sm:$0xff]  ;;  %v34_v9 = vld [vmem:[%s603_s0 + $0x28] sm:$0xff] }
   0x3   :  { %v46_v6 = vpack.c.bf16 %v32_v4, %v31_v2  ;;  %v394_v10 = vld [vmem:[%s604_s1] sm:$0xff]   ;;  %v59_v12 = vld [vmem:[%s605_s2 + $0x10] sm:$0xff]  ;;  %v47_v14 = vpack.c.bf16 %v34_v9, %v33_v8  ;;  %v58_v15 = vld [vmem:[%s605_s2 + $0x8] sm:$0xff] }
   0x4   :  { %382 = vmatprep.subr.msk.bf16.mxu0 %vm91_vm0, %v45_v3  ;;  %v99_v7 = vsel %vm91_vm0, %v45_v3, 0  ;;  %v57_v11 = vld [vmem:[%s605_s2] sm:$0xff]  ;;  %370 = vmatprep.mubr.msk.bf16.mxu0 %vm91_vm0, %v394_v10  ;;  %v60_v16 = vld [vmem:[%s605_s2 + $0x18] sm:$0xff] }
   0x5   :  { %355 = vmatpush3.bf16.xpose.msra.mxu0 %v99_v7  ;;  %63 = vperm.xlu0 %392, %v57_v11   ;;  %v102_v13 = vsel %vm91_vm0, %v46_v6, 0 }
   0x6   :  { %383 = vmatprep.subr.msk.bf16.mxu0 %vm91_vm0, %v46_v6  ;;  %73 = vperm.xlu1 %393, %v59_v12  }
   0x9   :  { %68 = vperm.xlu0 %392, %v58_v15  }
   0xd   :  { %357 = vmatpush3.bf16.xpose.msra.mxu0 %v102_v13 }
   0xe   :  { %13 = vsyncpa [#allocation4], 0  ;;  %384 = vmatprep.subr.msk.bf16.mxu0 %vm91_vm0, %v47_v14  ;;  %78 = vperm.xlu1 %393, %v60_v16   ;;  %v179_v17 = vld [vmem:[%s607_s4] sm:$0xff]  ;;  %v35_v18 = vld [vmem:[%s603_s0 + $0x30] sm:$0xff]  ;;  %v105_v21 = vsel %vm91_vm0, %v47_v14, 0  ;;  %vm213_vm1 = vcmask 261120  }
   0xf   :  { %v36_v19 = vld [vmem:[%s603_s0 + $0x38] sm:$0xff]  ;;  %v180_v20 = vld [vmem:[%s607_s4 + $0x8] sm:$0xff]  ;;  %185 = vperm.xlu0 %392, %v179_v17   ;;  %v181_v23 = vld [vmem:[%s607_s4 + $0x10] sm:$0xff]  ;;  %s431_s14 = smov [#allocation3]  }
  0x10   :  { %v48_v22 = vpack.c.bf16 %v36_v19, %v35_v18  ;;  %v182_v24 = vld [vmem:[%s607_s4 + $0x18] sm:$0xff]  ;;  %v277_v25 = vld [vmem:[%s608_s5] sm:$0xff]  ;;  %v38_v27 = vld [vmem:[%s603_s0 + $0x48] sm:$0xff]  ;;  %s324_s15 = sshll.u32 %s431_s14, 4  ;;  %s325_s15 = int_to_ptr.vmem [resolvable:$true] %s324_s15 }
  0x11   :  { %v37_v26 = vld [vmem:[%s603_s0 + $0x40] sm:$0xff]  ;;  %v278_v28 = vld [vmem:[%s608_s5 + $0x8] sm:$0xff]  ;;  %v279_v31 = vld [vmem:[%s608_s5 + $0x10] sm:$0xff]  ;;  %s406_s16 = scalar_lea.vmem %s325_s15, 16  ;;  %s410_s17 = scalar_lea.vmem %s325_s15, 32 }
  0x12   :  { %190 = vperm.xlu1 %393, %v180_v20   ;;  %v108_v29 = vsel %vm91_vm0, %v48_v22, 0  ;;  %v49_v30 = vpack.c.bf16 %v38_v27, %v37_v26  ;;  %v280_v32 = vld [vmem:[%s608_s5 + $0x18] sm:$0xff]  ;;  %v39_v33 = vld [vmem:[%s603_s0 + $0x50] sm:$0xff]  ;;  %v41_v37 = vld [vmem:[%s603_s0 + $0x60] sm:$0xff]  ;;  %p407_p0 = scmp.ne.s32.totalorder %s325_s15, %s406_s16  ;;  %p411_p1 = scmp.lt.s32.totalorder %s325_s15, %s325_s15 }
  0x13   :  { %195 = vperm.xlu0 %392, %v181_v23   ;;  %v40_v34 = vld [vmem:[%s603_s0 + $0x58] sm:$0xff]  ;;  %v42_v38 = vld [vmem:[%s603_s0 + $0x68] sm:$0xff]  ;;  %v43_v41 = vld [vmem:[%s603_s0 + $0x70] sm:$0xff]  ;;  %p412_p2 = scmp.lt.s32.totalorder %s410_s17, %s406_s16 }
  0x14   :  { %v111_v35 = vsel %vm91_vm0, %v49_v30, 0  ;;  %v50_v36 = vpack.c.bf16 %v40_v34, %v39_v33  ;;  %v51_v40 = vpack.c.bf16 %v42_v38, %v41_v37  ;;  %v44_v42 = vld [vmem:[%s603_s0 + $0x78] sm:$0xff]  ;;  %v395_v46 = vld [vmem:[%s604_s1 + $0x8] sm:$0xff]   ;;  %v396_v47 = vld [vmem:[%s606_s3] sm:$0xff]   ;;  %v315_v37 = vstv %s609_s6 }
  0x15   :  { %359 = vmatpush3.bf16.xpose.msra.mxu0 %v105_v21  ;;  %v52_v44 = vpack.c.bf16 %v44_v42, %v43_v41  ;;  %378 = vmatprep.mubr.msk.bf16.mxu1 %vm213_vm1, %v396_v47  ;;  %v397_v0 = vld [vmem:[%s606_s3 + $0x8] sm:$0xff]   ;;  %p413_p3 = por %p412_p2, %p411_p1 }
  0x16   :  { %385 = vmatprep.subr.msk.bf16.mxu0 %vm91_vm0, %v48_v22  ;;  %200 = vperm.xlu1 %393, %v182_v24   ;;  %v114_v39 = vsel %vm91_vm0, %v50_v36, 0  ;;  %v117_v43 = vsel %vm91_vm0, %v51_v40, 0 }
  0x17   :  { %283 = vperm.xlu0 %392, %v277_v25   ;;  %v120_v45 = vsel %vm91_vm0, %v52_v44, 0  ;;  %p414_p4 = pnand %p413_p3, %p407_p0 }
  0x1a   :  { %288 = vperm.xlu1 %393, %v278_v28  }
  0x1b   :  { %293 = vperm.xlu0 %392, %v279_v31  }
  0x1d   :  { %361 = vmatpush3.bf16.xpose.msra.mxu0 %v108_v29 }
  0x1e   :  { %386 = vmatprep.subr.msk.bf16.mxu0 %vm91_vm0, %v49_v30  ;;  %298 = vperm.xlu1 %393, %v280_v32  }
  0x25   :  { %363 = vmatpush3.bf16.xpose.msra.mxu0 %v111_v35 }
  0x26   :  { %387 = vmatprep.subr.msk.bf16.mxu0 %vm91_vm0, %v50_v36 }
  0x2d   :  { %365 = vmatpush3.bf16.xpose.msra.mxu0 %v114_v39 }
  0x2e   :  { %388 = vmatprep.subr.msk.bf16.mxu0 %vm91_vm0, %v51_v40 }
  0x35   :  { %367 = vmatpush3.bf16.xpose.msra.mxu0 %v117_v43 }
  0x36   :  { %389 = vmatprep.subr.msk.bf16.mxu0 %vm91_vm0, %v52_v44 }
  0x3d   :  { %369 = vmatpush3.bf16.xpose.msra.mxu0 %v120_v45 }
  0x44   :  { %371 = vmatmul.mubr.msk.bf16.vlgmr.msra.gmra.mrb[0].mxu0 %vm91_vm0, %v395_v46 }
  0x84   :  { %v64_v49 = vpop.permute.xlu0 %63 }
  0x85   :  { %v74_v48 = vpop.permute.xlu1 %73 }
  0x88   :  { %v69_v54 = vpop.permute.xlu0 %68 }
  0x8d   :  { %v79_v52 = vpop.permute.xlu1 %78 }
  0x8e   :  { %v186_v1 = vpop.permute.xlu0 %185 }
  0x91   :  { %v191_v2 = vpop.permute.xlu1 %190 }
  0x92   :  { %v196_v4 = vpop.permute.xlu0 %195 }
  0x95   :  { %v201_v6 = vpop.permute.xlu1 %200 }
  0x96   :  { %v284_v15 = vpop.permute.xlu0 %283 }
  0x99   :  { %v289_v18 = vpop.permute.xlu1 %288 }
  0x9a   :  { %v294_v25 = vpop.permute.xlu0 %293 }
  0x9d   :  { %v299_v28 = vpop.permute.xlu1 %298 }
 0x117   :  { %v372_v50 = vpop.f32.mrb[0].mxu0 }
 0x118   :  { %v156_v51 = vpop.f32.mrb[1].mxu0  ;;  %v165_v55 = vadd.f32 %v372_v50, %v74_v48 }
 0x119   :  { %v373_v53 = vpop.f32.mrb[2].mxu0  ;;  %v157_v58 = vadd.f32 %v156_v51, %v64_v49 }
 0x11a   :  { %v168_v56 = vadd.f32 %v373_v53, %v79_v52  ;;  %v159_v57 = vpop.f32.mrb[3].mxu0 }
 0x11b   :  { %v160_v59 = vadd.f32 %v159_v57, %v69_v54 }
 0x11c   :  { %v172_v60 = vpack.c.bf16 %v168_v56, %v165_v55 }
 0x11d   :  { %v171_v61 = vpack.c.bf16 %v160_v59, %v157_v58 }
 0x11f   :  { %398 = vtanh.bf16 %v171_v61 }
 0x120   :  { %400 = vtanh.bf16 %v172_v60 }
 0x12a   :  { %v399_v62 = vpop.eup %398 }
 0x12b   :  { %374 = vmatprep.subr.bf16.mxu1 %v399_v62  ;;  %v401_v63 = vpop.eup %400 }
 0x12c   :  { %375 = vmatpush3.bf16.msra.mxu1 %v399_v62 }
 0x12d   :  { %376 = vmatprep.subr.bf16.mxu1 %v401_v63 }
 0x130   :  { %377 = vmatpush3.bf16.msra.mxu1 %v401_v63 }
 0x133   :  { %379 = vmatmul.mubr.msk.bf16.vlgmr.msra.gmra.mrb[0].mxu1 %vm213_vm1, %v397_v0 }
 0x206   :  { %v380_v3 = vpop.f32.mrb[0].mxu1 }
 0x207   :  { %v254_v5 = vpop.f32.mrb[1].mxu1  ;;  %v263_v8 = vadd.f32 %v380_v3, %v196_v4 }
 0x208   :  { %v381_v7 = vpop.f32.mrb[2].mxu1  ;;  %v255_v11 = vadd.f32 %v254_v5, %v186_v1 }
 0x209   :  { %v266_v9 = vadd.f32 %v381_v7, %v201_v6  ;;  %v257_v10 = vpop.f32.mrb[3].mxu1 }
 0x20a   :  { %v258_v12 = vadd.f32 %v257_v10, %v191_v2 }
 0x20b   :  { %v270_v13 = vpack.c.bf16 %v266_v9, %v263_v8 }
 0x20c   :  { %v269_v14 = vpack.c.bf16 %v258_v12, %v255_v11 }
 0x20d   :  { %402 = vtanh.bf16 %v270_v13 }
 0x20e   :  { %404 = vtanh.bf16 %v269_v14 }
 0x218   :  { %v403_v16 = vpop.eup %402 }
 0x219   :  { %v405_v17 = vpop.eup %404  ;;  %v275_v19 = vunpack.c.l.bf16 %v403_v16  ;;  %v276_v22 = vunpack.c.h.bf16 %v403_v16 }
 0x21a   :  { %v273_v20 = vunpack.c.l.bf16 %v405_v17  ;;  %v274_v21 = vunpack.c.h.bf16 %v405_v17 }
 0x21b   :  { %v303_v26 = vmul.f32 %v294_v25, %v275_v19  ;;  %v304_v29 = vmul.f32 %v299_v28, %v276_v22 }
 0x21c   :  { %v301_v23 = vmul.f32 %v284_v15, %v273_v20  ;;  %v302_v24 = vmul.f32 %v289_v18, %v274_v21 }
 0x21e   :  { %v305_v27 = vadd.f32 %v302_v24, %v301_v23 }
 0x220   :  { %v306_v30 = vadd.f32 %v305_v27, %v303_v26 }
 0x222   :  { %v307_v31 = vadd.f32 %v306_v30, %v304_v29 }
 0x224   :  { %v308_v32 = vrot.slane %v307_v31, 4 }
 0x226   :  { %v309_v33 = vadd.f32 %v308_v32, %v307_v31 }
 0x228   :  { %v310_v34 = vrot.slane %v309_v33, 2 }
 0x22a   :  { %v311_v35 = vadd.f32 %v310_v34, %v309_v33 }
 0x22c   :  { %v312_v36 = vrot.slane %v311_v35, 1 }
 0x22e   :  { %v313_v38 = vadd.f32 %v312_v36, %v311_v35 }
 0x230   :  { %v316_v39 = vadd.f32 %v315_v37, %v313_v38 }
 0x232   :  { %317 = vst [vmem:[#allocation3] sm:$0x1] %v316_v39 }
 0x233   :  { %417 = shalt.err (!%p414_p4)
}
 0x234   :  { %s418_s19 = scalar_lea.hbm %s610_s7, 16 }
 0x235   :  { %p419_p5 = scmp.ne.s32.totalorder %s610_s7, %s418_s19  ;;  %p422_p6 = scmp.lt.u32.totalorder %s418_s19, %s610_s7 }
 0x237   :  { %p424_p7 = pnand %p422_p6, %p419_p5 }
 0x239   :  { %427 = shalt.err (!%p424_p7)
}
 0x23a   :  { %327 = dma.vmem_to_hbm [thread:$0]  %s325_s15, 16, %s610_s7, [#allocation4]  }
 0x23b   :  { %428 = dma.done.wait [#allocation4], 16  }
 0x23c   :  { %429 = vsyncadd [#allocation4], 4294967280 }
 0x23d   :  { %331 = vsyncpa [#allocation4], 1 }

</bundles_post_ra>
